<compile_context>
chip_gen: v5e
topology: v5e:2x2
jax: 0.10.0
libtpu: 0.0.40
codegen_flags: <defaults>
</compile_context>

<pallas_src>
import jax
import jax.numpy as jnp
from jax import lax
from jax.experimental import pallas as pl
from jax.experimental.pallas import tpu as pltpu

_LANES = 128   # lane width of every row slab / weight matrix


def _residual_block_kernel(x_ref, w1_ref, w2_ref, s1_ref, b1_ref,
                           s2_ref, b2_ref, out_ref, xpad_s, mid_s):
    # x_ref   : (1, H, 128) f32  image rows flattened over (W,C) into lanes,
    #                            already at lane offset C with zero side-pad lanes
    # w{1,2}  : (3, 128, 128) bf16 block-banded weights (one (K,N) matrix per ky)
    # s*/b*   : (1, 128) f32 folded BN scale/bias, tiled over W, zero on pad lanes
    # out_ref : (1, H, 128) f32
    # xpad_s  : (H+2, 128) bf16 scratch -- spatially padded input rows
    # mid_s   : (H+2, 128) bf16 scratch -- spatially padded relu(bn1(conv1(x)))
    H = out_ref.shape[1]

    xf = x_ref[0]                                   # (H, 128) f32, kept for the residual

    # Zero both scratches (a couple of full bf16 tiles each) so the top/bottom
    # halo rows are 0.  Cheap enough to redo every grid step -> correct even if
    # the batch axis is sharded across TensorCores.
    xpad_s[...] = jnp.zeros_like(xpad_s)
    mid_s[...] = jnp.zeros_like(mid_s)

    # Interior rows: left/right spatial padding is already encoded as zero lanes
    # of the incoming block, so this is a full-lane store.
    xpad_s[pl.ds(1, H), :] = xf.astype(xpad_s.dtype)

    # conv1: 3 MXU matmuls (one per kernel row ky), f32 accumulation.
    acc = jnp.zeros((H, _LANES), jnp.float32)
    for ky in range(3):
        acc = acc + jnp.dot(xpad_s[pl.ds(ky, H), :], w1_ref[ky],
                            preferred_element_type=jnp.float32)
    mid = jnp.maximum(acc * s1_ref[...] + b1_ref[...], 0.0)   # BN1 + ReLU (pad lanes stay 0)
    mid_s[pl.ds(1, H), :] = mid.astype(mid_s.dtype)

    # conv2 + BN2 + ReLU, residual add with the f32 input, final ReLU.
    acc = jnp.zeros((H, _LANES), jnp.float32)
    for ky in range(3):
        acc = acc + jnp.dot(mid_s[pl.ds(ky, H), :], w2_ref[ky],
                            preferred_element_type=jnp.float32)
    branch = jnp.maximum(acc * s2_ref[...] + b2_ref[...], 0.0)
    out_ref[0] = jnp.maximum(xf + branch, 0.0)


def _banded_weights(w_hwio, W, C, off):
    """(3,3,C,C) HWIO -> (3, 128, 128) bf16 block-banded matrices.

    band[ky][(x+kx)*C + ci, off + x*C + co] = w[ky, kx, ci, co], so
      out_row[y] = sum_ky padded_row[y+ky] @ band[ky]
    is the 3x3 'SAME' conv of row y with the result placed at lane offset `off`
    (i.e. already in the padded-row layout the next conv consumes).
    """
    w = w_hwio.astype(jnp.bfloat16)
    WC = W * C
    eye = jnp.eye(W, dtype=jnp.bfloat16)
    bands = []
    for ky in range(3):
        m = jnp.zeros((_LANES, _LANES), jnp.bfloat16)
        for kx in range(3):
            blk = jnp.kron(eye, w[ky, kx])                       # (W*C, W*C) block diag
            m = m + jnp.pad(blk, ((kx * C, _LANES - kx * C - WC),
                                  (off, _LANES - off - WC)))
        bands.append(m)
    return jnp.stack(bands)


def _tiled_bn(v, W, C, off):
    """(C,) per-channel vector -> (1,128) f32, tiled over W, zero on pad lanes."""
    t = jnp.tile(v.astype(jnp.float32), W)
    return jnp.pad(t, (off, _LANES - off - W * C)).reshape(1, _LANES)


@jax.jit
def residual_block_forward(x_nhwc, w1, w2, s1, b1, s2, b2):
    """x_nhwc: (N, H, W, C) float32.  Returns (N, H, W, C) float32."""
    N, H, W, C = x_nhwc.shape
    WC = W * C
    off = C                                     # interior starts after the left spatial pad
    if (W + 2) * C > _LANES:
        raise ValueError("this kernel requires (W+2)*C <= 128")   # TODO(synk): K/N tiling

    # Flatten (W, C) into the lane axis; pre-place the zero left/right spatial pads.
    x_rows = jnp.pad(x_nhwc.reshape(N, H, WC),
                     ((0, 0), (0, 0), (off, _LANES - off - WC)))

    w1b = _banded_weights(w1, W, C, off)
    w2b = _banded_weights(w2, W, C, off)
    s1t, b1t = _tiled_bn(s1, W, C, off), _tiled_bn(b1, W, C, off)
    s2t, b2t = _tiled_bn(s2, W, C, off), _tiled_bn(b2, W, C, off)

    # VMEM budget from the actual footprint (not a flat 32 MiB), 2x headroom.
    blk = H * _LANES * 4
    vmem = (2 * 2 * blk                          # x + out blocks, f32, double-buffered
            + 2 * 2 * 3 * _LANES * _LANES * 2    # w1 + w2 (3,128,128) bf16, double-buffered
            + 2 * 4 * _LANES * 4 * 2             # 4 BN vectors (1,128) f32, double-buffered
            + 2 * (H + 2) * _LANES * 2)          # two bf16 scratches
    vmem_limit = int(min(max(2 * vmem, 4 * 1024 * 1024), 100 * 1024 * 1024))

    out = pl.pallas_call(
        _residual_block_kernel,
        out_shape=jax.ShapeDtypeStruct((N, H, _LANES), jnp.float32),
        grid=(N,),
        in_specs=[
            pl.BlockSpec((1, H, _LANES), lambda n: (n, 0, 0)),
            pl.BlockSpec((3, _LANES, _LANES), lambda n: (0, 0, 0)),
            pl.BlockSpec((3, _LANES, _LANES), lambda n: (0, 0, 0)),
            pl.BlockSpec((1, _LANES), lambda n: (0, 0)),
            pl.BlockSpec((1, _LANES), lambda n: (0, 0)),
            pl.BlockSpec((1, _LANES), lambda n: (0, 0)),
            pl.BlockSpec((1, _LANES), lambda n: (0, 0)),
        ],
        out_specs=pl.BlockSpec((1, H, _LANES), lambda n: (n, 0, 0)),
        scratch_shapes=[
            pltpu.VMEM((H + 2, _LANES), jnp.bfloat16),
            pltpu.VMEM((H + 2, _LANES), jnp.bfloat16),
        ],
        compiler_params=pltpu.CompilerParams(
            dimension_semantics=("parallel",),
            vmem_limit_bytes=vmem_limit),
    )(x_rows, w1b, w2b, s1t, b1t, s2t, b2t)

    return out[..., off:off + WC].reshape(N, H, W, C)


def _reference(x_nhwc, w1, w2, s1, b1, s2, b2):
    # Mirrors the kernel's numerics: the conv operands (x, w1, w2 and the
    # conv1->bn1->relu intermediate) are bf16-rounded; accumulation, BN and the
    # residual add are f32, and the residual adds the ORIGINAL f32 x.
    q = lambda a: a.astype(jnp.bfloat16).astype(jnp.float32)
    dn = lax.conv_dimension_numbers(x_nhwc.shape, w1.shape, ("NHWC", "HWIO", "NHWC"))
    out = lax.conv_general_dilated(q(x_nhwc), q(w1), (1, 1), "SAME",
                                   dimension_numbers=dn,
                                   precision=lax.Precision.HIGHEST)
    out = jnp.maximum(out * s1 + b1, 0.0)
    out = lax.conv_general_dilated(q(out), q(w2), (1, 1), "SAME",
                                   dimension_numbers=dn,
                                   precision=lax.Precision.HIGHEST)
    out = jnp.maximum(out * s2 + b2, 0.0)
    return jnp.maximum(x_nhwc + out, 0.0)


if __name__ == "__main__":
    N, C, H, W = 2, 4, 16, 16        # in_channel == out_channel (same_shape=True)
    key = jax.random.PRNGKey(0)
    ks = jax.random.split(key, 11)

    # PyTorch-style NCHW input.
    x_nchw = jax.random.normal(ks[0], (N, C, H, W), jnp.float32)

    # Deterministic synthetic parameters (conv3x3 weights are bias-free), HWIO.
    w1 = 0.2 * jax.random.normal(ks[1], (3, 3, C, C), jnp.float32)
    w2 = 0.2 * jax.random.normal(ks[2], (3, 3, C, C), jnp.float32)
    eps = 1e-5
    g1 = 1.0 + 0.1 * jax.random.normal(ks[3], (C,), jnp.float32)
    bt1 = 0.1 * jax.random.normal(ks[4], (C,), jnp.float32)
    rm1 = 0.1 * jax.random.normal(ks[5], (C,), jnp.float32)
    rv1 = jax.random.uniform(ks[6], (C,), jnp.float32, 0.5, 1.5)
    g2 = 1.0 + 0.1 * jax.random.normal(ks[7], (C,), jnp.float32)
    bt2 = 0.1 * jax.random.normal(ks[8], (C,), jnp.float32)
    rm2 = 0.1 * jax.random.normal(ks[9], (C,), jnp.float32)
    rv2 = jax.random.uniform(ks[10], (C,), jnp.float32, 0.5, 1.5)

    # Fold BN (eval mode) into per-channel scale/bias.
    s1 = g1 / jnp.sqrt(rv1 + eps)
    b1 = bt1 - rm1 * s1
    s2 = g2 / jnp.sqrt(rv2 + eps)
    b2 = bt2 - rm2 * s2

    # NCHW -> NHWC for the kernel.
    x_nhwc = jnp.transpose(x_nchw, (0, 2, 3, 1))

    out_nhwc = residual_block_forward(x_nhwc, w1, w2, s1, b1, s2, b2)
    out_nhwc = jax.block_until_ready(out_nhwc)
    out_nchw = jnp.transpose(out_nhwc, (0, 3, 1, 2))   # back to PyTorch layout

    ref = _reference(x_nhwc, w1, w2, s1, b1, s2, b2)
    max_err = float(jnp.max(jnp.abs(out_nhwc - ref)))
    assert out_nchw.shape == (N, C, H, W)
    assert max_err < 2e-3, f"mismatch vs reference: max abs err = {max_err}"
    print("KERNEL_OK")
</pallas_src>

<mosaic_0001>
module attributes {stable_mosaic.version = 11 : i64} {
  func.func @_residual_block_kernel(%arg0: i32, %arg1: memref<1x16x128xf32, #tpu.memory_space<vmem>>, %arg2: memref<3x128x128xbf16, #tpu.memory_space<vmem>>, %arg3: memref<3x128x128xbf16, #tpu.memory_space<vmem>>, %arg4: memref<1x128xf32, #tpu.memory_space<vmem>>, %arg5: memref<1x128xf32, #tpu.memory_space<vmem>>, %arg6: memref<1x128xf32, #tpu.memory_space<vmem>>, %arg7: memref<1x128xf32, #tpu.memory_space<vmem>>, %arg8: memref<1x16x128xf32, #tpu.memory_space<vmem>>, %arg9: memref<18x128xbf16, #tpu.memory_space<vmem>>, %arg10: memref<18x128xbf16, #tpu.memory_space<vmem>>) attributes {dimension_semantics = [#tpu.dimension_semantics<parallel>], iteration_bounds = array<i64: 2>, scalar_prefetch = 0 : i64, scratch_operands = 2 : i64, tpu.core_type = #tpu.core_type<tc>, window_params = [{transform_indices = @transform_0, window_bounds = array<i64: 1, 16, 128>}, {pipeline_mode = #tpu.pipeline_mode<synchronous>, transform_indices = @transform_1, window_bounds = array<i64: 3, 128, 128>}, {pipeline_mode = #tpu.pipeline_mode<synchronous>, transform_indices = @transform_2, window_bounds = array<i64: 3, 128, 128>}, {pipeline_mode = #tpu.pipeline_mode<synchronous>, transform_indices = @transform_3, window_bounds = array<i64: 1, 128>}, {pipeline_mode = #tpu.pipeline_mode<synchronous>, transform_indices = @transform_4, window_bounds = array<i64: 1, 128>}, {pipeline_mode = #tpu.pipeline_mode<synchronous>, transform_indices = @transform_5, window_bounds = array<i64: 1, 128>}, {pipeline_mode = #tpu.pipeline_mode<synchronous>, transform_indices = @transform_6, window_bounds = array<i64: 1, 128>}, {transform_indices = @transform_7, window_bounds = array<i64: 1, 16, 128>}]} {
    %c0 = arith.constant 0 : index
    %c0_0 = arith.constant 0 : index
    %c0_1 = arith.constant 0 : index
    %0 = vector.load %arg1[%c0, %c0_0, %c0_1] : memref<1x16x128xf32, #tpu.memory_space<vmem>>, vector<1x16x128xf32>
    %1 = vector.shape_cast %0 : vector<1x16x128xf32> to vector<16x128xf32>
    %cst = arith.constant 0.000000e+00 : bf16
    %2 = vector.broadcast %cst : bf16 to vector<18x128xbf16>
    %c0_2 = arith.constant 0 : index
    %c0_3 = arith.constant 0 : index
    %3 = vector.load %arg9[%c0_2, %c0_3] : memref<18x128xbf16, #tpu.memory_space<vmem>>, vector<18x128xbf16>
    tpu.vector_store %arg9[%c0_2, %c0_3], %2 {strides = array<i32>} : memref<18x128xbf16, #tpu.memory_space<vmem>>, vector<18x128xbf16>,
    %cst_4 = arith.constant 0.000000e+00 : bf16
    %4 = vector.broadcast %cst_4 : bf16 to vector<18x128xbf16>
    %c0_5 = arith.constant 0 : index
    %c0_6 = arith.constant 0 : index
    %5 = vector.load %arg10[%c0_5, %c0_6] : memref<18x128xbf16, #tpu.memory_space<vmem>>, vector<18x128xbf16>
    tpu.vector_store %arg10[%c0_5, %c0_6], %4 {strides = array<i32>} : memref<18x128xbf16, #tpu.memory_space<vmem>>, vector<18x128xbf16>,
    %6 = arith.truncf %1 : vector<16x128xf32> to vector<16x128xbf16>
    %c1 = arith.constant 1 : index
    %c0_7 = arith.constant 0 : index
    %7 = vector.load %arg9[%c1, %c0_7] : memref<18x128xbf16, #tpu.memory_space<vmem>>, vector<16x128xbf16>
    tpu.vector_store %arg9[%c1, %c0_7], %6 {strides = array<i32>} : memref<18x128xbf16, #tpu.memory_space<vmem>>, vector<16x128xbf16>,
    %cst_8 = arith.constant 0.000000e+00 : f32
    %8 = vector.broadcast %cst_8 : f32 to vector<16x128xf32>
    %c0_9 = arith.constant 0 : index
    %c0_10 = arith.constant 0 : index
    %9 = vector.load %arg9[%c0_9, %c0_10] : memref<18x128xbf16, #tpu.memory_space<vmem>>, vector<16x128xbf16>
    %c0_11 = arith.constant 0 : index
    %c0_12 = arith.constant 0 : index
    %c0_13 = arith.constant 0 : index
    %10 = vector.load %arg2[%c0_11, %c0_12, %c0_13] : memref<3x128x128xbf16, #tpu.memory_space<vmem>>, vector<1x128x128xbf16>
    %11 = vector.shape_cast %10 : vector<1x128x128xbf16> to vector<128x128xbf16>
    %cst_14 = arith.constant dense<0.000000e+00> : vector<16x128xf32>
    %12 = tpu.matmul %9, %11, %cst_14 {dimension_numbers = #tpu.dot_dimension_numbers<[1], [0], [0], [1], [0, 0, 1, 1], [], []>} : vector<16x128xbf16>, vector<128x128xbf16>, vector<16x128xf32> -> vector<16x128xf32>
    %13 = arith.addf %8, %12 : vector<16x128xf32>
    %c1_15 = arith.constant 1 : index
    %c0_16 = arith.constant 0 : index
    %14 = vector.load %arg9[%c1_15, %c0_16] : memref<18x128xbf16, #tpu.memory_space<vmem>>, vector<16x128xbf16>
    %c1_17 = arith.constant 1 : index
    %c0_18 = arith.constant 0 : index
    %c0_19 = arith.constant 0 : index
    %15 = vector.load %arg2[%c1_17, %c0_18, %c0_19] : memref<3x128x128xbf16, #tpu.memory_space<vmem>>, vector<1x128x128xbf16>
    %16 = vector.shape_cast %15 : vector<1x128x128xbf16> to vector<128x128xbf16>
    %cst_20 = arith.constant dense<0.000000e+00> : vector<16x128xf32>
    %17 = tpu.matmul %14, %16, %cst_20 {dimension_numbers = #tpu.dot_dimension_numbers<[1], [0], [0], [1], [0, 0, 1, 1], [], []>} : vector<16x128xbf16>, vector<128x128xbf16>, vector<16x128xf32> -> vector<16x128xf32>
    %18 = arith.addf %13, %17 : vector<16x128xf32>
    %c2 = arith.constant 2 : index
    %c0_21 = arith.constant 0 : index
    %19 = vector.load %arg9[%c2, %c0_21] : memref<18x128xbf16, #tpu.memory_space<vmem>>, vector<16x128xbf16>
    %c2_22 = arith.constant 2 : index
    %c0_23 = arith.constant 0 : index
    %c0_24 = arith.constant 0 : index
    %20 = vector.load %arg2[%c2_22, %c0_23, %c0_24] : memref<3x128x128xbf16, #tpu.memory_space<vmem>>, vector<1x128x128xbf16>
    %21 = vector.shape_cast %20 : vector<1x128x128xbf16> to vector<128x128xbf16>
    %cst_25 = arith.constant dense<0.000000e+00> : vector<16x128xf32>
    %22 = tpu.matmul %19, %21, %cst_25 {dimension_numbers = #tpu.dot_dimension_numbers<[1], [0], [0], [1], [0, 0, 1, 1], [], []>} : vector<16x128xbf16>, vector<128x128xbf16>, vector<16x128xf32> -> vector<16x128xf32>
    %23 = arith.addf %18, %22 : vector<16x128xf32>
    %c0_26 = arith.constant 0 : index
    %c0_27 = arith.constant 0 : index
    %24 = vector.load %arg4[%c0_26, %c0_27] : memref<1x128xf32, #tpu.memory_space<vmem>>, vector<1x128xf32>
    %25 = vector.broadcast %24 : vector<1x128xf32> to vector<16x128xf32>
    %26 = arith.mulf %23, %25 : vector<16x128xf32>
    %c0_28 = arith.constant 0 : index
    %c0_29 = arith.constant 0 : index
    %27 = vector.load %arg5[%c0_28, %c0_29] : memref<1x128xf32, #tpu.memory_space<vmem>>, vector<1x128xf32>
    %28 = vector.broadcast %27 : vector<1x128xf32> to vector<16x128xf32>
    %29 = arith.addf %26, %28 : vector<16x128xf32>
    %cst_30 = arith.constant 0.000000e+00 : f32
    %30 = vector.broadcast %cst_30 : f32 to vector<16x128xf32>
    %31 = arith.maximumf %29, %30 : vector<16x128xf32>
    %32 = arith.truncf %31 : vector<16x128xf32> to vector<16x128xbf16>
    %c1_31 = arith.constant 1 : index
    %c0_32 = arith.constant 0 : index
    %33 = vector.load %arg10[%c1_31, %c0_32] : memref<18x128xbf16, #tpu.memory_space<vmem>>, vector<16x128xbf16>
    tpu.vector_store %arg10[%c1_31, %c0_32], %32 {strides = array<i32>} : memref<18x128xbf16, #tpu.memory_space<vmem>>, vector<16x128xbf16>,
    %cst_33 = arith.constant 0.000000e+00 : f32
    %34 = vector.broadcast %cst_33 : f32 to vector<16x128xf32>
    %c0_34 = arith.constant 0 : index
    %c0_35 = arith.constant 0 : index
    %35 = vector.load %arg10[%c0_34, %c0_35] : memref<18x128xbf16, #tpu.memory_space<vmem>>, vector<16x128xbf16>
    %c0_36 = arith.constant 0 : index
    %c0_37 = arith.constant 0 : index
    %c0_38 = arith.constant 0 : index
    %36 = vector.load %arg3[%c0_36, %c0_37, %c0_38] : memref<3x128x128xbf16, #tpu.memory_space<vmem>>, vector<1x128x128xbf16>
    %37 = vector.shape_cast %36 : vector<1x128x128xbf16> to vector<128x128xbf16>
    %cst_39 = arith.constant dense<0.000000e+00> : vector<16x128xf32>
    %38 = tpu.matmul %35, %37, %cst_39 {dimension_numbers = #tpu.dot_dimension_numbers<[1], [0], [0], [1], [0, 0, 1, 1], [], []>} : vector<16x128xbf16>, vector<128x128xbf16>, vector<16x128xf32> -> vector<16x128xf32>
    %39 = arith.addf %34, %38 : vector<16x128xf32>
    %c1_40 = arith.constant 1 : index
    %c0_41 = arith.constant 0 : index
    %40 = vector.load %arg10[%c1_40, %c0_41] : memref<18x128xbf16, #tpu.memory_space<vmem>>, vector<16x128xbf16>
    %c1_42 = arith.constant 1 : index
    %c0_43 = arith.constant 0 : index
    %c0_44 = arith.constant 0 : index
    %41 = vector.load %arg3[%c1_42, %c0_43, %c0_44] : memref<3x128x128xbf16, #tpu.memory_space<vmem>>, vector<1x128x128xbf16>
    %42 = vector.shape_cast %41 : vector<1x128x128xbf16> to vector<128x128xbf16>
    %cst_45 = arith.constant dense<0.000000e+00> : vector<16x128xf32>
    %43 = tpu.matmul %40, %42, %cst_45 {dimension_numbers = #tpu.dot_dimension_numbers<[1], [0], [0], [1], [0, 0, 1, 1], [], []>} : vector<16x128xbf16>, vector<128x128xbf16>, vector<16x128xf32> -> vector<16x128xf32>
    %44 = arith.addf %39, %43 : vector<16x128xf32>
    %c2_46 = arith.constant 2 : index
    %c0_47 = arith.constant 0 : index
    %45 = vector.load %arg10[%c2_46, %c0_47] : memref<18x128xbf16, #tpu.memory_space<vmem>>, vector<16x128xbf16>
    %c2_48 = arith.constant 2 : index
    %c0_49 = arith.constant 0 : index
    %c0_50 = arith.constant 0 : index
    %46 = vector.load %arg3[%c2_48, %c0_49, %c0_50] : memref<3x128x128xbf16, #tpu.memory_space<vmem>>, vector<1x128x128xbf16>
    %47 = vector.shape_cast %46 : vector<1x128x128xbf16> to vector<128x128xbf16>
    %cst_51 = arith.constant dense<0.000000e+00> : vector<16x128xf32>
    %48 = tpu.matmul %45, %47, %cst_51 {dimension_numbers = #tpu.dot_dimension_numbers<[1], [0], [0], [1], [0, 0, 1, 1], [], []>} : vector<16x128xbf16>, vector<128x128xbf16>, vector<16x128xf32> -> vector<16x128xf32>
    %49 = arith.addf %44, %48 : vector<16x128xf32>
    %c0_52 = arith.constant 0 : index
    %c0_53 = arith.constant 0 : index
    %50 = vector.load %arg6[%c0_52, %c0_53] : memref<1x128xf32, #tpu.memory_space<vmem>>, vector<1x128xf32>
    %51 = vector.broadcast %50 : vector<1x128xf32> to vector<16x128xf32>
    %52 = arith.mulf %49, %51 : vector<16x128xf32>
    %c0_54 = arith.constant 0 : index
    %c0_55 = arith.constant 0 : index
    %53 = vector.load %arg7[%c0_54, %c0_55] : memref<1x128xf32, #tpu.memory_space<vmem>>, vector<1x128xf32>
    %54 = vector.broadcast %53 : vector<1x128xf32> to vector<16x128xf32>
    %55 = arith.addf %52, %54 : vector<16x128xf32>
    %cst_56 = arith.constant 0.000000e+00 : f32
    %56 = vector.broadcast %cst_56 : f32 to vector<16x128xf32>
    %57 = arith.maximumf %55, %56 : vector<16x128xf32>
    %58 = arith.addf %1, %57 : vector<16x128xf32>
    %cst_57 = arith.constant 0.000000e+00 : f32
    %59 = vector.broadcast %cst_57 : f32 to vector<16x128xf32>
    %60 = arith.maximumf %58, %59 : vector<16x128xf32>
    %c0_58 = arith.constant 0 : index
    %c0_59 = arith.constant 0 : index
    %c0_60 = arith.constant 0 : index
    %61 = vector.load %arg8[%c0_58, %c0_59, %c0_60] : memref<1x16x128xf32, #tpu.memory_space<vmem>>, vector<1x16x128xf32>
    %62 = vector.shape_cast %61 : vector<1x16x128xf32> to vector<16x128xf32>
    %63 = vector.shape_cast %60 : vector<16x128xf32> to vector<1x16x128xf32>
    tpu.vector_store %arg8[%c0_58, %c0_59, %c0_60], %63 {strides = array<i32>} : memref<1x16x128xf32, #tpu.memory_space<vmem>>, vector<1x16x128xf32>,
    return
  }
  func.func @transform_0(%arg0: i32) -> (i32, i32, i32) {
    %c0_i32 = arith.constant 0 : i32
    %c0_i32_0 = arith.constant 0 : i32
    %c0_i32_1 = arith.constant 0 : i32
    return %arg0, %c0_i32, %c0_i32_0 : i32, i32, i32
  }
  func.func @transform_1(%arg0: i32) -> (i32, i32, i32) {
    %c0_i32 = arith.constant 0 : i32
    %c0_i32_0 = arith.constant 0 : i32
    %c0_i32_1 = arith.constant 0 : i32
    %c0_i32_2 = arith.constant 0 : i32
    return %c0_i32, %c0_i32_0, %c0_i32_1 : i32, i32, i32
  }
  func.func @transform_2(%arg0: i32) -> (i32, i32, i32) {
    %c0_i32 = arith.constant 0 : i32
    %c0_i32_0 = arith.constant 0 : i32
    %c0_i32_1 = arith.constant 0 : i32
    %c0_i32_2 = arith.constant 0 : i32
    return %c0_i32, %c0_i32_0, %c0_i32_1 : i32, i32, i32
  }
  func.func @transform_3(%arg0: i32) -> (i32, i32) {
    %c0_i32 = arith.constant 0 : i32
    %c0_i32_0 = arith.constant 0 : i32
    %c0_i32_1 = arith.constant 0 : i32
    return %c0_i32, %c0_i32_0 : i32, i32
  }
  func.func @transform_4(%arg0: i32) -> (i32, i32) {
    %c0_i32 = arith.constant 0 : i32
    %c0_i32_0 = arith.constant 0 : i32
    %c0_i32_1 = arith.constant 0 : i32
    return %c0_i32, %c0_i32_0 : i32, i32
  }
  func.func @transform_5(%arg0: i32) -> (i32, i32) {
    %c0_i32 = arith.constant 0 : i32
    %c0_i32_0 = arith.constant 0 : i32
    %c0_i32_1 = arith.constant 0 : i32
    return %c0_i32, %c0_i32_0 : i32, i32
  }
  func.func @transform_6(%arg0: i32) -> (i32, i32) {
    %c0_i32 = arith.constant 0 : i32
    %c0_i32_0 = arith.constant 0 : i32
    %c0_i32_1 = arith.constant 0 : i32
    return %c0_i32, %c0_i32_0 : i32, i32
  }
  func.func @transform_7(%arg0: i32) -> (i32, i32, i32) {
    %c0_i32 = arith.constant 0 : i32
    %c0_i32_0 = arith.constant 0 : i32
    %c0_i32_1 = arith.constant 0 : i32
    return %arg0, %c0_i32, %c0_i32_0 : i32, i32, i32
  }
}

</mosaic_0001>

<bundles_post_ra>
// kernel: tile.38
= control target key start
LH: loop header
LB: loop body
LE: loop exit
PB: predicated region body
PF: predicated region fallthrough
CT: control target
= control target key end

     0   :  { %s28_s0 = inlined_call_operand.vmem [shape: f32[4], index: 0, kind: input, shape index: {}]   ;;  %s29_s1 = inlined_call_operand.vmem [shape: f32[16,4], index: 1, kind: output, shape index: {}]  }
   0x1   :  { %v4_v0 = vld [vmem:[%s28_s0] ss:$0 sm:$0xff] }
   0x2   :  { %5 = vst [vmem:[%s29_s1] sm:$0xff] %v4_v0 }
   0x3   :  { %8 = vst [vmem:[%s29_s1 + $0x8] sm:$0xff] %v4_v0 }

// kernel: tile.39
= control target key start
LH: loop header
LB: loop body
LE: loop exit
PB: predicated region body
PF: predicated region fallthrough
CT: control target
= control target key end

     0   :  { %s131_s10 = smov 60   ;;  %s132_s11 = smov 52   ;;  %vm3_vm0 = vcmask 31744   ;;  %vm9_vm1 = vcmask 523744   ;;  %vm15_vm2 = vcmask 490944   ;;  %vm21_vm3 = vcmask 458144   ;;  %s207_s0 = inlined_call_operand.vmem [shape: f32[16,4], index: 0, kind: input, shape index: {}]   ;;  %s208_s1 = inlined_call_operand.vmem [shape: f32[64], index: 1, kind: output, shape index: {}]  }
   0x1   :  { %v101_v0 = vld [vmem:[%s207_s0 + $0xf] sm:$0x1]   ;;  %v103_v1 = vld [vmem:[%s207_s0 + $0xd] sm:$0x1]   ;;  %v105_v2 = vld [vmem:[%s207_s0 + $0xb] sm:$0x1]  }
   0x2   :  { %7 = vrot.lane.b32.xlu0 %v101_v0, %s131_s10  ;;  %19 = vrot.lane.b32.xlu1 %v103_v1, %s132_s11  ;;  %s133_s14 = smov 44   ;;  %v102_v3 = vld [vmem:[%s207_s0 + $0xe] sm:$0x1]   ;;  %v104_v4 = vld [vmem:[%s207_s0 + $0xc] sm:$0x1]   ;;  %s134_s19 = smov 56  }
   0x3   :  { %31 = vrot.lane.b32.xlu2 %v105_v2, %s133_s14  ;;  %s135_s20 = smov 48   ;;  %v106_v5 = vld [vmem:[%s207_s0 + $0xa] sm:$0x1]   ;;  %s136_s23 = smov 40   ;;  %v107_v6 = vld [vmem:[%s207_s0 + $0x9] sm:$0x1]  }
   0x4   :  { %v108_v7 = vld [vmem:[%s207_s0 + $0x8] sm:$0x1]   ;;  %s137_s28 = smov 36   ;;  %s138_s29 = smov 32   ;;  %v109_v8 = vld [vmem:[%s207_s0 + $0x7] sm:$0x1]  }
   0x5   :  { %s139_s3 = smov 28   ;;  %v110_v9 = vld [vmem:[%s207_s0 + $0x6] sm:$0x1]   ;;  %v111_v10 = vld [vmem:[%s207_s0 + $0x5] sm:$0x1]   ;;  %s140_s8 = smov 24  }
   0x6   :  { %s141_s9 = smov 20   ;;  %v112_v11 = vld [vmem:[%s207_s0 + $0x4] sm:$0x1]   ;;  %s142_s12 = smov 16   ;;  %v113_v12 = vld [vmem:[%s207_s0 + $0x3] sm:$0x1]  }
   0x7   :  { %v114_v13 = vld [vmem:[%s207_s0 + $0x2] sm:$0x1]   ;;  %s143_s17 = smov 12   ;;  %s144_s18 = smov 8   ;;  %v115_v14 = vld [vmem:[%s207_s0 + $0x1] sm:$0x1]  }
   0x8   :  { %s145_s21 = smov 4   ;;  %v2_v15 = vld [vmem:[%s207_s0] sm:$0x1]   ;;  %vm27_vm4 = vcmask 425344   ;;  %vm33_vm5 = vcmask 392544   ;;  %vm39_vm6 = vcmask 359744  }
   0x9   :  { %4 = vst.msk [vmem:[#allocation0] sm:$0x1] %vm3_vm0, %v2_v15   ;;  %vm45_vm7 = vcmask 326944   ;;  %vm51_vm8 = vcmask 294144   ;;  %vm57_vm9 = vcmask 261344   ;;  %vm63_vm10 = vcmask 228544  }
   0xa   :  { %13 = vrot.lane.b32.xlu0 %v102_v3, %s134_s19  ;;  %25 = vrot.lane.b32.xlu1 %v104_v4, %s135_s20  ;;  %vm69_vm11 = vcmask 195744   ;;  %vm75_vm12 = vcmask 162944   ;;  %vm81_vm13 = vcmask 130144   ;;  %vm87_vm14 = vcmask 97344  }
   0xb   :  { %37 = vrot.lane.b32.xlu2 %v106_v5, %s136_s23  ;;  %vm93_vm15 = vcmask 64544  }
  0x12   :  { %43 = vrot.lane.b32.xlu0 %v107_v6, %s137_s28  ;;  %49 = vrot.lane.b32.xlu1 %v108_v7, %s138_s29 }
  0x13   :  { %55 = vrot.lane.b32.xlu2 %v109_v8, %s139_s3 }
  0x1a   :  { %61 = vrot.lane.b32.xlu0 %v110_v9, %s140_s8  ;;  %67 = vrot.lane.b32.xlu1 %v111_v10, %s141_s9 }
  0x1b   :  { %73 = vrot.lane.b32.xlu2 %v112_v11, %s142_s12 }
  0x22   :  { %79 = vrot.lane.b32.xlu0 %v113_v12, %s143_s17  ;;  %85 = vrot.lane.b32.xlu1 %v114_v13, %s144_s18 }
  0x23   :  { %91 = vrot.lane.b32.xlu2 %v115_v14, %s145_s21 }
  0x5d   :  { %v32_v16 = vpop.permute.xlu2 %31  }
  0x65   :  { %v38_v17 = vpop.permute.xlu2 %37  }
  0x6d   :  { %v56_v18 = vpop.permute.xlu2 %55  }
  0x74   :  { %v8_v19 = vpop.permute.xlu0 %7   ;;  %v20_v20 = vpop.permute.xlu1 %19  }
  0x75   :  { %10 = vst.msk [vmem:[#allocation0] sm:$0x1] %vm9_vm1, %v8_v19   ;;  %v74_v21 = vpop.permute.xlu2 %73  }
  0x7c   :  { %v14_v22 = vpop.permute.xlu0 %13   ;;  %v26_v23 = vpop.permute.xlu1 %25  }
  0x7d   :  { %16 = vst.msk [vmem:[#allocation0] sm:$0x1] %vm15_vm2, %v14_v22   ;;  %v92_v24 = vpop.permute.xlu2 %91  }
  0x7e   :  { %22 = vst.msk [vmem:[#allocation0] sm:$0x1] %vm21_vm3, %v20_v20  }
  0x7f   :  { %28 = vst.msk [vmem:[#allocation0] sm:$0x1] %vm27_vm4, %v26_v23  }
  0x80   :  { %34 = vst.msk [vmem:[#allocation0] sm:$0x1] %vm33_vm5, %v32_v16  }
  0x81   :  { %40 = vst.msk [vmem:[#allocation0] sm:$0x1] %vm39_vm6, %v38_v17  }
  0x84   :  { %v44_v25 = vpop.permute.xlu0 %43   ;;  %v50_v26 = vpop.permute.xlu1 %49  }
  0x85   :  { %46 = vst.msk [vmem:[#allocation0] sm:$0x1] %vm45_vm7, %v44_v25  }
  0x86   :  { %52 = vst.msk [vmem:[#allocation0] sm:$0x1] %vm51_vm8, %v50_v26  }
  0x87   :  { %58 = vst.msk [vmem:[#allocation0] sm:$0x1] %vm57_vm9, %v56_v18  }
  0x8c   :  { %v62_v27 = vpop.permute.xlu0 %61   ;;  %v68_v28 = vpop.permute.xlu1 %67  }
  0x8d   :  { %64 = vst.msk [vmem:[#allocation0] sm:$0x1] %vm63_vm10, %v62_v27  }
  0x8e   :  { %70 = vst.msk [vmem:[#allocation0] sm:$0x1] %vm69_vm11, %v68_v28  }
  0x8f   :  { %76 = vst.msk [vmem:[#allocation0] sm:$0x1] %vm75_vm12, %v74_v21  }
  0x94   :  { %v80_v29 = vpop.permute.xlu0 %79   ;;  %v86_v30 = vpop.permute.xlu1 %85  }
  0x95   :  { %82 = vst.msk [vmem:[#allocation0] sm:$0x1] %vm81_vm13, %v80_v29  }
  0x96   :  { %88 = vst.msk [vmem:[#allocation0] sm:$0x1] %vm87_vm14, %v86_v30  }
  0x97   :  { %94 = vst.msk [vmem:[#allocation0] sm:$0x1] %vm93_vm15, %v92_v24  }
  0x9e   :  { %v97_v31 = vld [vmem:[#allocation0] sm:$0x1] }
  0x9f   :  { %100 = vst [vmem:[%s208_s1] sm:$0x1] %v97_v31 }

// kernel: residual_block_forward.1
= control target key start
LH: loop header
LB: loop body
LE: loop exit
PB: predicated region body
PF: predicated region fallthrough
CT: control target
= control target key end

     0   :  { %s1380_s24 = smov 0   ;;  %s1602_s0 = inlined_call_operand.vmem [shape: f32[2,16,128], index: 0, kind: input, shape index: {}]   ;;  %s1603_s1 = inlined_call_operand.vmem [shape: bf16[3,128,128], index: 1, kind: input, shape index: {}]   ;;  %s1604_s2 = inlined_call_operand.vmem [shape: bf16[3,128,128], index: 2, kind: input, shape index: {}]   ;;  %s1605_s3 = inlined_call_operand.vmem [shape: f32[1,128], index: 3, kind: input, shape index: {}]   ;;  %s1606_s4 = inlined_call_operand.vmem [shape: f32[1,128], index: 4, kind: input, shape index: {}]   ;;  %s1607_s5 = inlined_call_operand.vmem [shape: f32[1,128], index: 5, kind: input, shape index: {}]   ;;  %s1608_s6 = inlined_call_operand.vmem [shape: f32[1,128], index: 6, kind: input, shape index: {}]   ;;  %s1609_s7 = inlined_call_operand.vmem [shape: f32[2,16,128], index: 7, kind: output, shape index: {}]  }
   0x1 LB: > { %s987_s25 = sadd.s32 4294967295, %s1337_s24   ;;  %p991_p0 = scmp.ge.s32.totalorder %s1337_s24, 1  ;;  %s1337_s24 = sphi %s1380_s24, %s17_s24  }
   0x2   : > { %p237_p1 = scmp.lt.s32.totalorder %s1337_s24, 3 }
   0x4   : > { %p238_p2 = pnand %p991_p0, %p237_p1 }
   0x5   : > { %p269_p3 = scmp.lt.s32.totalorder (!%p238_p2), %s987_s25, 1 }
   0x6   : > { %241 = sbr.rel (%p238_p2) target bundleno = 375 (0x177), region = 48 }
   0xb   : > { %v1271_v0 = vld [vmem:[%s1603_s1 + $0x78] sm:$0xff]  ;;  %v1339_v3 = vmov 0   ;;  %v1270_v4 = vld [vmem:[%s1603_s1 + $0x70] sm:$0xff]  ;;  %s1617_s25 = smov (!%p269_p3, %s987_s25), 1  ;;  %v1269_v7 = vld [vmem:[%s1603_s1 + $0x68] sm:$0xff]  ;;  %vm313_vm0 = vcmask 1043456  }
   0xc   : > { %v1263_v1 = vld [vmem:[%s1603_s1 + $0x38] sm:$0xff]  ;;  %282 = vst [vmem:[#allocation2] sm:$0xf] %v1339_v3  ;;  %431 = vmatpush.bf16.msra.mxu0 %v1271_v0  ;;  %v1262_v5 = vld [vmem:[%s1603_s1 + $0x30] sm:$0xff]  ;;  %s1254_s15 = sshll.u32 %s1617_s25, 4  ;;  %v1261_v8 = vld [vmem:[%s1603_s1 + $0x28] sm:$0xff] }
   0xd   : > { %v1279_v2 = vld [vmem:[%s1603_s1 + $0xb8] sm:$0xff]  ;;  %494 = vmatpush.bf16.msra.mxu1 %v1263_v1  ;;  %283 = vst [vmem:[#allocation2 + $0x4] sm:$0xf] %v1339_v3  ;;  %v1278_v6 = vld [vmem:[%s1603_s1 + $0xb0] sm:$0xff]  ;;  %s273_s18 = scalar_lea.vmem %s1602_s0, %s1254_s15  ;;  %v1277_v9 = vld [vmem:[%s1603_s1 + $0xa8] sm:$0xff]  ;;  %vm320_vm1 = vcmask 1040384   ;;  %s278_s12 = scalar_lea.vmem %s1609_s7, %s1254_s15 }
   0xe   : > { %582 = vmatpush.bf16.msra.mxu2 %v1279_v2  ;;  %284 = vst [vmem:[#allocation2 + $0x8] sm:$0x1] %v1339_v3  ;;  %v1268_v10 = vld [vmem:[%s1603_s1 + $0x60] sm:$0xff]  ;;  %v1431_v13 = vld [vmem:[%s273_s18 + $0x8] sm:$0xff]  ;;  %vm290_vm2 = vsmask.f32 256 }
   0xf   : > { %v1260_v11 = vld [vmem:[%s1603_s1 + $0x20] sm:$0xff]  ;;  %285 = vst [vmem:[#allocation3] sm:$0xf] %v1339_v3  ;;  %v289_v16 = vpack.c.bf16 %v1431_v13, %v1431_v13  ;;  %vm291_vm3 = vsmask.f32 4368  ;;  %v1267_v22 = vld [vmem:[%s1603_s1 + $0x58] sm:$0xff]  ;;  %vm1458_vm7 = vmand %vm320_vm1, %vm290_vm2 }
  0x10   : > { %432 = vmatpush.bf16.msra.mxu0 %v1270_v4  ;;  %v1429_v12 = vld [vmem:[%s273_s18] sm:$0xff]  ;;  %286 = vst [vmem:[#allocation3 + $0x4] sm:$0xf] %v1339_v3  ;;  %vm314_vm4 = vsmask.f32 7938  ;;  %vm1441_vm5 = vmor %vm290_vm2, %vm291_vm3  ;;  %v1259_v23 = vld [vmem:[%s1603_s1 + $0x18] sm:$0xff] }
  0x11   : > { %495 = vmatpush.bf16.msra.mxu1 %v1262_v5  ;;  %v1276_v14 = vld [vmem:[%s1603_s1 + $0xa0] sm:$0xff]  ;;  %v288_v15 = vpack.c.bf16 %v1429_v12, %v1429_v12  ;;  %287 = vst [vmem:[#allocation3 + $0x8] sm:$0x1] %v1339_v3  ;;  %v302_v19 = vshrl.u32 %v289_v16, 16  ;;  %v305_v20 = vshll.u32 %v289_v16, 16  ;;  %vm1452_vm6 = vmand %vm313_vm0, %vm314_vm4  ;;  %v1275_v30 = vld [vmem:[%s1603_s1 + $0x98] sm:$0xff] }
  0x12   : > { %583 = vmatpush.bf16.msra.mxu2 %v1278_v6  ;;  %v1266_v38 = vld [vmem:[%s1603_s1 + $0x50] sm:$0xff]  ;;  %v1265_v41 = vld [vmem:[%s1603_s1 + $0x48] sm:$0xff]  ;;  %v1264_v44 = vld [vmem:[%s1603_s1 + $0x40] sm:$0xff]  ;;  %vm529_vm8 = vcmask 1046528   ;;  %vm369_vm9 = vsmask.f32 7424 }
  0x13   : > { %v294_v17 = vshrl.u32 %v288_v15, 16  ;;  %v297_v18 = vshll.u32 %v288_v15, 16  ;;  %v304_v25 = vrot.slane %v302_v19, 7  ;;  %v316_v27 = vld [vmem:[#allocation2] sm:$0xf]  ;;  %v1258_v39 = vld [vmem:[%s1603_s1 + $0x10] sm:$0xff] }
  0x14   : > { %433 = vmatpush.bf16.msra.mxu0 %v1269_v7  ;;  %v1274_v40 = vld [vmem:[%s1603_s1 + $0x90] sm:$0xff]  ;;  %v1257_v42 = vld [vmem:[%s1603_s1 + $0x8] sm:$0xff]  ;;  %v1256_v46 = vld [vmem:[%s1603_s1] sm:$0xff] }
  0x15   : > { %496 = vmatpush.bf16.msra.mxu1 %v1261_v8  ;;  %v296_v24 = vrot.slane %v294_v17, 7  ;;  %v322_v29 = vld [vmem:[#allocation2 + $0x8] sm:$0x1]  ;;  %v307_v33 = vor.u32 %v305_v20, %v304_v25  ;;  %v309_v34 = vrot.slane %v304_v25, 4  ;;  %v1272_v49 = vld [vmem:[%s1603_s1 + $0x80] sm:$0xff]  ;;  %v1287_v0 = vld [vmem:[%s1604_s2 + $0x38] sm:$0xff] }
  0x16   : > { %584 = vmatpush.bf16.msra.mxu2 %v1277_v9  ;;  %v1273_v43 = vld [vmem:[%s1603_s1 + $0x88] sm:$0xff]  ;;  %v1286_v1 = vld [vmem:[%s1604_s2 + $0x30] sm:$0xff]  ;;  %v1303_v2 = vld [vmem:[%s1604_s2 + $0xb8] sm:$0xff] }
  0x17   : > { %v299_v31 = vor.u32 %v297_v18, %v296_v24  ;;  %v300_v32 = vrot.slane %v296_v24, 4  ;;  %v323_v37 = vsel %vm1458_vm7, %v309_v34, %v322_v29  ;;  %v1285_v3 = vld [vmem:[%s1604_s2 + $0x28] sm:$0xff]  ;;  %v1295_v4 = vld [vmem:[%s1604_s2 + $0x78] sm:$0xff]  ;;  %v1302_v5 = vld [vmem:[%s1604_s2 + $0xb0] sm:$0xff] }
  0x18   : > { %434 = vmatpush.bf16.msra.mxu0 %v1268_v10  ;;  %324 = vst [vmem:[#allocation2 + $0x8] sm:$0x1] %v323_v37  ;;  %746 = vmatpush.bf16.msra.mxu3 %v1295_v4  ;;  %v1284_v6 = vld [vmem:[%s1604_s2 + $0x20] sm:$0xff]  ;;  %v1294_v7 = vld [vmem:[%s1604_s2 + $0x70] sm:$0xff]  ;;  %v1301_v8 = vld [vmem:[%s1604_s2 + $0xa8] sm:$0xff] }
  0x19   : > { %497 = vmatpush.bf16.msra.mxu1 %v1260_v11  ;;  %v308_v35 = vsel %vm1441_vm5, %v300_v32, %v307_v33  ;;  %v317_v36 = vsel %vm1452_vm6, %v299_v31, %v316_v27  ;;  %v1283_v9 = vld [vmem:[%s1604_s2 + $0x18] sm:$0xff]  ;;  %v1293_v10 = vld [vmem:[%s1604_s2 + $0x68] sm:$0xff]  ;;  %v1300_v11 = vld [vmem:[%s1604_s2 + $0xa0] sm:$0xff] }
  0x1a   : > { %585 = vmatpush.bf16.msra.mxu2 %v1276_v14  ;;  %318 = vst [vmem:[#allocation2] sm:$0xf] %v317_v36  ;;  %v1282_v14 = vld [vmem:[%s1604_s2 + $0x10] sm:$0xff]  ;;  %v1292_v15 = vld [vmem:[%s1604_s2 + $0x60] sm:$0xff]  ;;  %v1299_v17 = vld [vmem:[%s1604_s2 + $0x98] sm:$0xff] }
  0x1b   : > { %319 = vst [vmem:[#allocation2 + $0x4] sm:$0xf] %v308_v35  ;;  %v1281_v18 = vld [vmem:[%s1604_s2 + $0x8] sm:$0xff]  ;;  %v1291_v19 = vld [vmem:[%s1604_s2 + $0x58] sm:$0xff]  ;;  %v1280_v24 = vld [vmem:[%s1604_s2] sm:$0xff] }
  0x1c   : > { %435 = vmatpush.bf16.msra.mxu0 %v1267_v22  ;;  %747 = vmatpush.bf16.msra.mxu3 %v1294_v7  ;;  %v1298_v22 = vld [vmem:[%s1604_s2 + $0x90] sm:$0xff]  ;;  %v1327_v27 = vld [vmem:[%s1605_s3] ss:$0 sm:$0xff]  ;;  %v1297_v32 = vld [vmem:[%s1604_s2 + $0x88] sm:$0xff] }
  0x1d   : > { %498 = vmatpush.bf16.msra.mxu1 %v1259_v23  ;;  %v1290_v25 = vld [vmem:[%s1604_s2 + $0x50] sm:$0xff]  ;;  %v1328_v31 = vld [vmem:[%s1606_s4] ss:$0 sm:$0xff]  ;;  %v1289_v36 = vld [vmem:[%s1604_s2 + $0x48] sm:$0xff] }
  0x1e   : > { %586 = vmatpush.bf16.msra.mxu2 %v1275_v30  ;;  %v1296_v37 = vld [vmem:[%s1604_s2 + $0x80] sm:$0xff] }
  0x1f   : > { %v343_v50 = vld [vmem:[#allocation2 + $0x8] sm:$0x1] }
  0x20   : > { %436 = vmatpush.bf16.msra.mxu0 %v1266_v38  ;;  %v366_v53 = vunpack.c.l.b16 %v343_v50  ;;  %748 = vmatpush.bf16.msra.mxu3 %v1293_v10  ;;  %v634_v50 = vld [vmem:[#allocation3] sm:$0xf] }
  0x21   : > { %499 = vmatpush.bf16.msra.mxu1 %v1258_v39  ;;  %v1313_v45 = vld [vmem:[#allocation2] sm:$0xe] }
  0x22   : > { %587 = vmatpush.bf16.msra.mxu2 %v1274_v40  ;;  %v1305_v47 = vld [vmem:[#allocation2] sm:$0xff]   ;;  %v368_v56 = vpack.c.b16 %v366_v53, %v366_v53 }
  0x23   : > { %v1312_v48 = vld [vmem:[#allocation2] sm:$0xf0]  ;;  %v373_v51 = vshll.u32 %v1305_v47, 16  ;;  %v371_v54 = vshrl.u32 %v1305_v47, 16 }
  0x24   : > { %437 = vmatpush.bf16.msra.mxu0 %v1265_v41  ;;  %v1314_v52 = vor.u32 %v1313_v45, %v1312_v48  ;;  %v378_v59 = vshll.u32 %v368_v56, 16  ;;  %v531_v60 = vrot.slane %v368_v56, 1  ;;  %749 = vmatpush.bf16.msra.mxu3 %v1292_v15  ;;  %v1288_v39 = vld [vmem:[%s1604_s2 + $0x40] sm:$0xff] }
  0x25   : > { %500 = vmatpush.bf16.msra.mxu1 %v1257_v42  ;;  %v375_v55 = vrot.slane %v373_v51, 1 }
  0x26   : > { %588 = vmatpush.bf16.msra.mxu2 %v1273_v43  ;;  %v530_v57 = vrot.slane %v1314_v52, 1  ;;  %v380_v61 = vrot.slane %v378_v59, 1 }
  0x27   : > { %v376_v58 = vor.u32 %v375_v55, %v371_v54 }
  0x28   : > { %438 = vmatpush.bf16.msra.mxu0 %v1264_v44  ;;  %v532_v62 = vsel %vm529_vm8, %v530_v57, %v531_v60  ;;  %750 = vmatpush.bf16.msra.mxu3 %v1291_v19 }
  0x29   : > { %501 = vmatpush.bf16.msra.mxu1 %v1256_v46  ;;  %v381_v63 = vsel %vm369_vm9, %v376_v58, %v380_v61  ;;  %v638_v58 = vld [vmem:[#allocation3 + $0x8] sm:$0x1] }
  0x2a   : > { %589 = vmatpush.bf16.msra.mxu2 %v1272_v49 }
  0x2b   : > { %439 = vmatmul.bf16.vlgmr.msra.gmra.mxu0 %v381_v63 }
  0x2c   : > { %502 = vmatmul.bf16.vlgmr.msra.gmra.mxu1 %v1305_v47  ;;  %809 = vmatpush.bf16.msrb.mxu0 %v1287_v0 }
  0x2d   : > { %590 = vmatmul.bf16.vlgmr.msra.gmra.mxu2 %v532_v62  ;;  %896 = vmatpush.bf16.msrb.mxu1 %v1303_v2 }
  0x2e   : > { %751 = vmatpush.bf16.msra.mxu3 %v1290_v25 }
  0x30   : > { %810 = vmatpush.bf16.msrb.mxu0 %v1286_v1 }
  0x31   : > { %897 = vmatpush.bf16.msrb.mxu1 %v1302_v5 }
  0x32   : > { %752 = vmatpush.bf16.msra.mxu3 %v1289_v36 }
  0x34   : > { %811 = vmatpush.bf16.msrb.mxu0 %v1285_v3 }
  0x35   : > { %898 = vmatpush.bf16.msrb.mxu1 %v1301_v8 }
  0x36   : > { %753 = vmatpush.bf16.msra.mxu3 %v1288_v39 }
  0x38   : > { %812 = vmatpush.bf16.msrb.mxu0 %v1284_v6 }
  0x39   : > { %899 = vmatpush.bf16.msrb.mxu1 %v1300_v11 }
  0x3c   : > { %813 = vmatpush.bf16.msrb.mxu0 %v1283_v9 }
  0x3d   : > { %900 = vmatpush.bf16.msrb.mxu1 %v1299_v17 }
  0x40   : > { %814 = vmatpush.bf16.msrb.mxu0 %v1282_v14 }
  0x41   : > { %901 = vmatpush.bf16.msrb.mxu1 %v1298_v22 }
  0x44   : > { %815 = vmatpush.bf16.msrb.mxu0 %v1281_v18 }
  0x45   : > { %902 = vmatpush.bf16.msrb.mxu1 %v1297_v32 }
  0x48   : > { %816 = vmatpush.bf16.msrb.mxu0 %v1280_v24 }
  0x49   : > { %903 = vmatpush.bf16.msrb.mxu1 %v1296_v37 }
  0xa8   : > { %v440_v20 = vpop.f32.mrf.mxu0 }
  0xa9   : > { %v503_v16 = vpop.f32.mrf.mxu1 }
  0xaa   : > { %v504_v23 = vadd.f32 %v503_v16, %v440_v20  ;;  %v1329_v20 = vld [vmem:[%s1607_s5] ss:$0 sm:$0xff] }
  0xb0   : > { %v591_v29 = vpop.f32.mrf.mxu2  ;;  %v442_v34 = vpop.f32.mrf.mxu0 }
  0xb1   : > { %v596_v30 = vadd.f32 %v591_v29, %v504_v23  ;;  %v505_v35 = vpop.f32.mrf.mxu1  ;;  %v1330_v23 = vld [vmem:[%s1608_s6] ss:$0 sm:$0xff] }
  0xb2   : > { %v506_v41 = vadd.f32 %v505_v35, %v442_v34 }
  0xb3   : > { %v602_v33 = vmul.f32 %v1327_v27, %v596_v30 }
  0xb5   : > { %v608_v38 = vadd.f32 %v1328_v31, %v602_v33 }
  0xb7   : > { %v610_v40 = vmax.f32 %v608_v38, 0.0 }
  0xb8   : > { %v593_v42 = vpop.f32.mrf.mxu2 }
  0xb9   : > { %v612_v43 = vpack.c.bf16 %v610_v40, %v610_v40  ;;  %v597_v44 = vadd.f32 %v593_v42, %v506_v41 }
  0xbb   : > { %v615_v45 = vshrl.u32 %v612_v43, 16  ;;  %v603_v46 = vmul.f32 %v1327_v27, %v597_v44  ;;  %v618_v48 = vshll.u32 %v612_v43, 16 }
  0xbd   : > { %v617_v47 = vrot.slane %v615_v45, 7  ;;  %v609_v49 = vadd.f32 %v1328_v31, %v603_v46 }
  0xbf   : > { %v620_v51 = vor.u32 %v618_v48, %v617_v47  ;;  %v611_v52 = vmax.f32 %v609_v49, 0.0  ;;  %v621_v59 = vrot.slane %v617_v47, 4 }
  0xc1   : > { %v635_v53 = vsel %vm1452_vm6, %v620_v51, %v634_v50  ;;  %v613_v54 = vpack.c.bf16 %v611_v52, %v611_v52 }
  0xc2   : > { %636 = vst [vmem:[#allocation3] sm:$0xf] %v635_v53 }
  0xc3   : > { %v623_v55 = vshrl.u32 %v613_v54, 16  ;;  %v626_v57 = vshll.u32 %v613_v54, 16 }
  0xc5   : > { %v625_v56 = vrot.slane %v623_v55, 7 }
  0xc7   : > { %v628_v60 = vor.u32 %v626_v57, %v625_v56  ;;  %v630_v61 = vrot.slane %v625_v56, 4 }
  0xc9   : > { %v629_v62 = vsel %vm1441_vm5, %v621_v59, %v628_v60  ;;  %v639_v63 = vsel %vm1458_vm7, %v630_v61, %v638_v58  ;;  %v1316_v3 = vld [vmem:[#allocation3] sm:$0xe] }
  0xca   : > { %637 = vst [vmem:[#allocation3 + $0x4] sm:$0xf] %v629_v62 }
  0xcb   : > { %640 = vst [vmem:[#allocation3 + $0x8] sm:$0x1] %v639_v63 }
  0xd1   : > { %v1309_v0 = vld [vmem:[#allocation3] sm:$0xff]  }
  0xd2   : > { %v1315_v26 = vld [vmem:[#allocation3] sm:$0xf0]  ;;  %v688_v1 = vshll.u32 %v1309_v0, 16  ;;  %817 = vmatmul.bf16.vlgmr.msrb.gmra.mxu0 %v1309_v0  ;;  %v659_v2 = vld [vmem:[#allocation3 + $0x8] sm:$0x1]  ;;  %v686_v8 = vshrl.u32 %v1309_v0, 16 }
  0xd3   : > { %v682_v4 = vunpack.c.l.b16 %v659_v2  ;;  %v1317_v5 = vor.u32 %v1316_v3, %v1315_v26 }
  0xd4   : > { %v690_v6 = vrot.slane %v688_v1, 1 }
  0xd5   : > { %v684_v7 = vpack.c.b16 %v682_v4, %v682_v4  ;;  %v844_v9 = vrot.slane %v1317_v5, 1 }
  0xd6   : > { %v691_v28 = vor.u32 %v690_v6, %v686_v8 }
  0xd7   : > { %v845_v10 = vrot.slane %v684_v7, 1  ;;  %v693_v21 = vshll.u32 %v684_v7, 16 }
  0xd9   : > { %v846_v11 = vsel %vm529_vm8, %v844_v9, %v845_v10  ;;  %v695_v14 = vrot.slane %v693_v21, 1 }
  0xda   : > { %904 = vmatmul.bf16.vlgmr.msrb.gmra.mxu1 %v846_v11 }
  0xdb   : > { %v696_v15 = vsel %vm369_vm9, %v691_v28, %v695_v14 }
  0xdc   : > { %754 = vmatmul.bf16.vlgmr.msra.gmra.mxu3 %v696_v15 }
 0x14f   : > { %v818_v16 = vpop.f32.mrf.mxu0 }
 0x157   : > { %v905_v17 = vpop.f32.mrf.mxu1  ;;  %v820_v27 = vpop.f32.mrf.mxu0 }
 0x15f   : > { %v755_v18 = vpop.f32.mrf.mxu3  ;;  %v907_v32 = vpop.f32.mrf.mxu1 }
 0x160   : > { %v819_v19 = vadd.f32 %v818_v16, %v755_v18 }
 0x162   : > { %v910_v22 = vadd.f32 %v905_v17, %v819_v19 }
 0x164   : > { %v916_v24 = vmul.f32 %v1329_v20, %v910_v22 }
 0x166   : > { %v922_v25 = vadd.f32 %v1330_v23, %v916_v24 }
 0x167   : > { %v757_v29 = vpop.f32.mrf.mxu3 }
 0x168   : > { %v924_v30 = vmax.f32 %v922_v25, 0.0  ;;  %v821_v31 = vadd.f32 %v820_v27, %v757_v29 }
 0x16a   : > { %v926_v33 = vadd.f32 %v924_v30, %v1429_v12  ;;  %v911_v34 = vadd.f32 %v907_v32, %v821_v31 }
 0x16c   : > { %v928_v35 = vmax.f32 %v926_v33, 0.0  ;;  %v917_v36 = vmul.f32 %v1329_v20, %v911_v34 }
 0x16e   : > { %930 = vst [vmem:[%s278_s12] sm:$0xff] %v928_v35  ;;  %v923_v37 = vadd.f32 %v1330_v23, %v917_v36 }
 0x170   : > { %v925_v38 = vmax.f32 %v923_v37, 0.0 }
 0x172   : > { %v927_v39 = vadd.f32 %v925_v38, %v1431_v13 }
 0x174   : > { %v929_v40 = vmax.f32 %v927_v39, 0.0 }
 0x176   : > { %931 = vst [vmem:[%s278_s12 + $0x8] sm:$0xff] %v929_v40 }
 0x177 PF: > { %s17_s24 = sadd.s32 1, %s1337_s24  }
 0x178   : > { %p14_p4 = scmp.ge.s32.totalorder %s17_s24, 4  }
 0x17a   :  { %16 = sbr.rel (!%p14_p4) target bundleno = 1 (0x1), region = 82 }

</bundles_post_ra>
